<compile_context>
chip_gen: v7x
topology: tpu7x:2x2x1
jax: 0.10.0
libtpu: 0.0.40
codegen_flags: <defaults>
</compile_context>

<pallas_src>
import functools

import numpy as np

import jax
import jax.numpy as jnp
from jax import lax
from jax.experimental import pallas as pl
from jax.experimental.pallas import tpu as pltpu

EPS = 1e-5


def bottleneck_kernel(x_ref, w1_ref, w2_ref, w3_ref, bn_ref, mask_ref, out_ref,
                      *, H, W):
    # x_ref    : (Cin, N*H*W)   channels on sublanes, flattened batch on lanes
    # w1_ref   : (P, Cin)       conv1 (1x1)
    # w2_ref   : (P, 9*P)       conv2 (3x3), columns ordered (kh, kw, ci)
    # w3_ref   : (4P, P)        conv3 (1x1)
    # bn_ref   : (4P, 6)        columns = [g1, b1, g2, b2, g3, b3] (1/2 use rows :P)
    # mask_ref : (9, N*H*W)     precomputed border masks, tap order (dy, dx)
    # out_ref  : (Cin, N*H*W)   lane-dense output slab
    Cin, NHW = x_ref.shape
    P = w1_ref.shape[0]

    x = x_ref[...]                      # (Cin, NHW)
    bnp = bn_ref[...]                   # (4P, 6)
    masks = mask_ref[...]               # (9, NHW)

    def bn(h, g, b):
        # training-mode BatchNorm (biased var) folded into per-channel scale/shift,
        # single-pass statistics: only 2 VPU ops touch the big slab.
        inv_n = 1.0 / h.shape[1]
        s1 = jnp.sum(h, axis=1, keepdims=True)           # lane reduce (XLU)
        s2 = jnp.sum(h * h, axis=1, keepdims=True)       # lane reduce (XLU)
        mean = s1 * inv_n
        var = s2 * inv_n - mean * mean
        scale = g * lax.rsqrt(var + EPS)                  # (C, 1) — EUP rsqrt
        shift = b - mean * scale
        return h * scale + shift

    # ---- conv1: 1x1 == channel matmul, then BN + ReLU -------------------------
    h1 = jnp.dot(w1_ref[...], x, preferred_element_type=jnp.float32)   # (P, NHW)
    h1 = jnp.maximum(bn(h1, bnp[:P, 0:1], bnp[:P, 1:2]), 0.0)

    # ---- conv2: 3x3 pad=1 as ONE im2col matmul (K = 9*P) ----------------------
    # Flat lane index p = n*H*W + h*W + w.  Tap (dy,dx) wants h1[:, p + dy*W + dx]
    # when (h+dy, w+dx) is inside the image, else 0.  Build each tap as a circular
    # lane rotation (XLU) of h1; the precomputed border mask zeroes every wrapped
    # or out-of-image lane, so this is bit-identical to zero-padded im2col.
    taps = []
    k = 0
    for dy in (-1, 0, 1):
        for dx in (-1, 0, 1):
            s = dy * W + dx
            if s == 0:
                taps.append(h1)                            # center tap: mask is all-ones
            else:
                rolled = pltpu.roll(h1, shift=(-s) % NHW, axis=1)
                taps.append(rolled * masks[k:k + 1, :])
            k += 1
    im2col = jnp.concatenate(taps, axis=0)                 # (9P, NHW)

    h2 = jnp.dot(w2_ref[...], im2col, preferred_element_type=jnp.float32)  # (P, NHW)
    h2 = jnp.maximum(bn(h2, bnp[:P, 2:3], bnp[:P, 3:4]), 0.0)

    # ---- conv3: 1x1 -> 4*planes, then BN ---------------------------------------
    h3 = jnp.dot(w3_ref[...], h2, preferred_element_type=jnp.float32)   # (4P, NHW)
    h3 = bn(h3, bnp[:, 4:5], bnp[:, 5:6])

    # ---- residual add + ReLU; lane-dense store ---------------------------------
    out_ref[...] = jnp.maximum(h3 + x, 0.0)


def _border_masks(N, H, W):
    """(9, N*H*W) f32 masks, tap order (dy, dx) in row-major over (-1,0,1)x(-1,0,1)."""
    hh, ww = np.meshgrid(np.arange(H), np.arange(W), indexing="ij")
    rows = []
    for dy in (-1, 0, 1):
        for dx in (-1, 0, 1):
            valid = ((hh + dy >= 0) & (hh + dy < H) &
                     (ww + dx >= 0) & (ww + dx < W))
            rows.append(np.broadcast_to(valid[None], (N, H, W)).reshape(-1))
    return jnp.asarray(np.stack(rows).astype(np.float32))


def bottleneck_pallas(x_nhwc, params):
    N, H, W, Cin = x_nhwc.shape
    P = params["w1"].shape[1]
    assert Cin == 4 * P, "identity residual requires inplanes == 4*planes"
    NHW = N * H * W

    # ---- wrapper-side layout plumbing (channels -> sublanes, N*H*W -> lanes) ---
    x_k = jnp.transpose(x_nhwc, (3, 0, 1, 2)).reshape(Cin, NHW)
    w1t = jnp.transpose(params["w1"])                                    # (P, Cin)
    w2f = jnp.transpose(params["w2"], (3, 0, 1, 2)).reshape(P, 9 * P)    # (P, 9P), cols (kh,kw,ci)
    w3t = jnp.transpose(params["w3"])                                    # (4P, P)
    masks = _border_masks(N, H, W)                                       # (9, NHW)

    # Pack the six BN affine vectors into one small VMEM operand (one DMA).
    def col(v):
        v = v.reshape(-1).astype(jnp.float32)
        return jnp.pad(v, (0, Cin - v.shape[0]))[:, None]
    bn_pack = jnp.concatenate(
        [col(params["g1"]), col(params["b1"]),
         col(params["g2"]), col(params["b2"]),
         col(params["g3"]), col(params["b3"])], axis=1)                  # (4P, 6)

    cost = pl.CostEstimate(
        flops=2 * (Cin * P + 9 * P * P + P * Cin) * NHW,
        transcendentals=3 * Cin,                                  # rsqrt per channel
        bytes_accessed=4 * (2 * Cin * NHW + P * Cin + 9 * P * P
                            + Cin * P + 9 * NHW + 6 * Cin),
    )

    vmem = pl.BlockSpec(memory_space=pltpu.MemorySpace.VMEM)
    out_cn = pl.pallas_call(
        functools.partial(bottleneck_kernel, H=H, W=W),
        out_shape=jax.ShapeDtypeStruct((Cin, NHW), jnp.float32),
        in_specs=[vmem] * 6,
        out_specs=vmem,
        cost_estimate=cost,
    )(x_k, w1t, w2f, w3t, bn_pack, masks)

    # back to NHWC for the caller
    return jnp.transpose(out_cn.reshape(Cin, N, H, W), (1, 2, 3, 0))


# ----------------------- pure-JAX reference (NHWC) --------------------------
def bottleneck_ref(x, p):
    def bn(h, g, b):
        mean = h.mean(axis=(0, 1, 2), keepdims=True)
        var = ((h - mean) ** 2).mean(axis=(0, 1, 2), keepdims=True)
        return (h - mean) / jnp.sqrt(var + EPS) * g.reshape(1, 1, 1, -1) \
               + b.reshape(1, 1, 1, -1)

    h = jnp.einsum("nhwc,co->nhwo", x, p["w1"])
    h = jax.nn.relu(bn(h, p["g1"], p["b1"]))
    h = lax.conv_general_dilated(
        h, p["w2"], window_strides=(1, 1), padding="SAME",
        dimension_numbers=("NHWC", "HWIO", "NHWC"))
    h = jax.nn.relu(bn(h, p["g2"], p["b2"]))
    h = jnp.einsum("nhwc,co->nhwo", h, p["w3"])
    h = bn(h, p["g3"], p["b3"])
    return jax.nn.relu(h + x)


if __name__ == "__main__":
    # module config: inplanes = 32, planes = 8, stride = 1, downsample = None
    N, H, W = 2, 8, 8
    planes = 8
    Cin = 4 * planes            # 32; N*H*W = 128 -> exactly one lane width

    key = jax.random.PRNGKey(0)
    ks = jax.random.split(key, 8)

    x_nchw = jax.random.normal(ks[0], (N, Cin, H, W), jnp.float32)
    x_nhwc = jnp.transpose(x_nchw, (0, 2, 3, 1))   # NCHW -> NHWC

    params = {
        # conv weights in channels-last-friendly layouts:
        #   w1: (Cin, P), w2: HWIO (3, 3, P, P), w3: (P, 4P)
        "w1": 0.1 * jax.random.normal(ks[1], (Cin, planes), jnp.float32),
        "w2": 0.1 * jax.random.normal(ks[2], (3, 3, planes, planes), jnp.float32),
        "w3": 0.1 * jax.random.normal(ks[3], (planes, Cin), jnp.float32),
        # BatchNorm affine params (gamma, beta)
        "g1": 1.0 + 0.1 * jax.random.normal(ks[4], (planes,), jnp.float32),
        "b1": 0.1 * jax.random.normal(ks[5], (planes,), jnp.float32),
        "g2": jnp.ones((planes,), jnp.float32),
        "b2": jnp.zeros((planes,), jnp.float32),
        "g3": 1.0 + 0.1 * jax.random.normal(ks[6], (Cin,), jnp.float32),
        "b3": 0.1 * jax.random.normal(ks[7], (Cin,), jnp.float32),
    }

    out = jax.block_until_ready(bottleneck_pallas(x_nhwc, params))
    ref = jax.block_until_ready(bottleneck_ref(x_nhwc, params))

    assert out.shape == (N, H, W, Cin)
    err = jnp.max(jnp.abs(out - ref))
    assert jnp.allclose(out, ref, atol=1e-3, rtol=1e-3), f"max abs err {err}"

    print("KERNEL_OK")
</pallas_src>

<mosaic_0001>
module attributes {stable_mosaic.version = 11 : i64} {
  func.func @bottleneck_kernel(%arg0: memref<32x128xf32, #tpu.memory_space<vmem>>, %arg1: memref<8x32xf32, #tpu.memory_space<vmem>>, %arg2: memref<8x72xf32, #tpu.memory_space<vmem>>, %arg3: memref<32x8xf32, #tpu.memory_space<vmem>>, %arg4: memref<32x6xf32, #tpu.memory_space<vmem>>, %arg5: memref<9x128xf32, #tpu.memory_space<vmem>>, %arg6: memref<32x128xf32, #tpu.memory_space<vmem>>) attributes {dimension_semantics = [], scalar_prefetch = 0 : i64, scratch_operands = 0 : i64, tpu.core_type = #tpu.core_type<tc>} {
    %c0 = arith.constant 0 : index
    %c0_0 = arith.constant 0 : index
    %0 = vector.load %arg0[%c0, %c0_0] : memref<32x128xf32, #tpu.memory_space<vmem>>, vector<32x128xf32>
    %c0_1 = arith.constant 0 : index
    %c0_2 = arith.constant 0 : index
    %1 = vector.load %arg4[%c0_1, %c0_2] : memref<32x6xf32, #tpu.memory_space<vmem>>, vector<32x6xf32>
    %c0_3 = arith.constant 0 : index
    %c0_4 = arith.constant 0 : index
    %2 = vector.load %arg5[%c0_3, %c0_4] : memref<9x128xf32, #tpu.memory_space<vmem>>, vector<9x128xf32>
    %c0_5 = arith.constant 0 : index
    %c0_6 = arith.constant 0 : index
    %3 = vector.load %arg1[%c0_5, %c0_6] : memref<8x32xf32, #tpu.memory_space<vmem>>, vector<8x32xf32>
    %cst = arith.constant dense<0.000000e+00> : vector<8x128xf32>
    %4 = tpu.matmul %3, %0, %cst {dimension_numbers = #tpu.dot_dimension_numbers<[1], [0], [0], [1], [0, 0, 1, 1], [], []>} : vector<8x32xf32>, vector<32x128xf32>, vector<8x128xf32> -> vector<8x128xf32>
    %5 = vector.extract_strided_slice %1 {offsets = [0, 0], sizes = [8, 1], strides = [1, 1]} : vector<32x6xf32> to vector<8x1xf32>
    %6 = vector.extract_strided_slice %1 {offsets = [0, 1], sizes = [8, 1], strides = [1, 1]} : vector<32x6xf32> to vector<8x1xf32>
    %cst_7 = arith.constant dense<0.000000e+00> : vector<8xf32>
    %7 = vector.multi_reduction <add>, %4, %cst_7 [1] : vector<8x128xf32> to vector<8xf32>
    %8 = vector.shape_cast %7 : vector<8xf32> to vector<8x1xf32>
    %9 = arith.mulf %4, %4 : vector<8x128xf32>
    %cst_8 = arith.constant dense<0.000000e+00> : vector<8xf32>
    %10 = vector.multi_reduction <add>, %9, %cst_8 [1] : vector<8x128xf32> to vector<8xf32>
    %11 = vector.shape_cast %10 : vector<8xf32> to vector<8x1xf32>
    %cst_9 = arith.constant 7.812500e-03 : f32
    %12 = vector.broadcast %cst_9 : f32 to vector<8x1xf32>
    %13 = arith.mulf %8, %12 : vector<8x1xf32>
    %cst_10 = arith.constant 7.812500e-03 : f32
    %14 = vector.broadcast %cst_10 : f32 to vector<8x1xf32>
    %15 = arith.mulf %11, %14 : vector<8x1xf32>
    %16 = arith.mulf %13, %13 : vector<8x1xf32>
    %17 = arith.subf %15, %16 : vector<8x1xf32>
    %cst_11 = arith.constant 9.99999974E-6 : f32
    %18 = vector.broadcast %cst_11 : f32 to vector<8x1xf32>
    %19 = arith.addf %17, %18 : vector<8x1xf32>
    %20 = math.rsqrt %19 : vector<8x1xf32>
    %21 = arith.mulf %5, %20 : vector<8x1xf32>
    %22 = arith.mulf %13, %21 : vector<8x1xf32>
    %23 = arith.subf %6, %22 : vector<8x1xf32>
    %24 = vector.broadcast %21 : vector<8x1xf32> to vector<8x128xf32>
    %25 = arith.mulf %4, %24 : vector<8x128xf32>
    %26 = vector.broadcast %23 : vector<8x1xf32> to vector<8x128xf32>
    %27 = arith.addf %25, %26 : vector<8x128xf32>
    %cst_12 = arith.constant 0.000000e+00 : f32
    %28 = vector.broadcast %cst_12 : f32 to vector<8x128xf32>
    %29 = arith.maximumf %27, %28 : vector<8x128xf32>
    %c9_i32 = arith.constant 9 : i32
    %30 = tpu.dynamic_rotate %29 by %c9_i32 dim 1 : vector<8x128xf32>, i32 -> vector<8x128xf32>
    %31 = vector.extract_strided_slice %2 {offsets = [0, 0], sizes = [1, 128], strides = [1, 1]} : vector<9x128xf32> to vector<1x128xf32>
    %32 = vector.broadcast %31 : vector<1x128xf32> to vector<8x128xf32>
    %33 = arith.mulf %30, %32 : vector<8x128xf32>
    %c8_i32 = arith.constant 8 : i32
    %34 = tpu.dynamic_rotate %29 by %c8_i32 dim 1 : vector<8x128xf32>, i32 -> vector<8x128xf32>
    %35 = vector.extract_strided_slice %2 {offsets = [1, 0], sizes = [1, 128], strides = [1, 1]} : vector<9x128xf32> to vector<1x128xf32>
    %36 = vector.broadcast %35 : vector<1x128xf32> to vector<8x128xf32>
    %37 = arith.mulf %34, %36 : vector<8x128xf32>
    %c7_i32 = arith.constant 7 : i32
    %38 = tpu.dynamic_rotate %29 by %c7_i32 dim 1 : vector<8x128xf32>, i32 -> vector<8x128xf32>
    %39 = vector.extract_strided_slice %2 {offsets = [2, 0], sizes = [1, 128], strides = [1, 1]} : vector<9x128xf32> to vector<1x128xf32>
    %40 = vector.broadcast %39 : vector<1x128xf32> to vector<8x128xf32>
    %41 = arith.mulf %38, %40 : vector<8x128xf32>
    %c1_i32 = arith.constant 1 : i32
    %42 = tpu.dynamic_rotate %29 by %c1_i32 dim 1 : vector<8x128xf32>, i32 -> vector<8x128xf32>
    %43 = vector.extract_strided_slice %2 {offsets = [3, 0], sizes = [1, 128], strides = [1, 1]} : vector<9x128xf32> to vector<1x128xf32>
    %44 = vector.broadcast %43 : vector<1x128xf32> to vector<8x128xf32>
    %45 = arith.mulf %42, %44 : vector<8x128xf32>
    %c127_i32 = arith.constant 127 : i32
    %46 = tpu.dynamic_rotate %29 by %c127_i32 dim 1 : vector<8x128xf32>, i32 -> vector<8x128xf32>
    %47 = vector.extract_strided_slice %2 {offsets = [5, 0], sizes = [1, 128], strides = [1, 1]} : vector<9x128xf32> to vector<1x128xf32>
    %48 = vector.broadcast %47 : vector<1x128xf32> to vector<8x128xf32>
    %49 = arith.mulf %46, %48 : vector<8x128xf32>
    %c121_i32 = arith.constant 121 : i32
    %50 = tpu.dynamic_rotate %29 by %c121_i32 dim 1 : vector<8x128xf32>, i32 -> vector<8x128xf32>
    %51 = vector.extract_strided_slice %2 {offsets = [6, 0], sizes = [1, 128], strides = [1, 1]} : vector<9x128xf32> to vector<1x128xf32>
    %52 = vector.broadcast %51 : vector<1x128xf32> to vector<8x128xf32>
    %53 = arith.mulf %50, %52 : vector<8x128xf32>
    %c120_i32 = arith.constant 120 : i32
    %54 = tpu.dynamic_rotate %29 by %c120_i32 dim 1 : vector<8x128xf32>, i32 -> vector<8x128xf32>
    %55 = vector.extract_strided_slice %2 {offsets = [7, 0], sizes = [1, 128], strides = [1, 1]} : vector<9x128xf32> to vector<1x128xf32>
    %56 = vector.broadcast %55 : vector<1x128xf32> to vector<8x128xf32>
    %57 = arith.mulf %54, %56 : vector<8x128xf32>
    %c119_i32 = arith.constant 119 : i32
    %58 = tpu.dynamic_rotate %29 by %c119_i32 dim 1 : vector<8x128xf32>, i32 -> vector<8x128xf32>
    %59 = vector.extract_strided_slice %2 {offsets = [8, 0], sizes = [1, 128], strides = [1, 1]} : vector<9x128xf32> to vector<1x128xf32>
    %60 = vector.broadcast %59 : vector<1x128xf32> to vector<8x128xf32>
    %61 = arith.mulf %58, %60 : vector<8x128xf32>
    %62 = tpu.concatenate %33, %37, %41, %45, %29, %49, %53, %57, %61 in 0 : vector<8x128xf32>, vector<8x128xf32>, vector<8x128xf32>, vector<8x128xf32>, vector<8x128xf32>, vector<8x128xf32>, vector<8x128xf32>, vector<8x128xf32>, vector<8x128xf32> -> vector<72x128xf32>
    %c0_13 = arith.constant 0 : index
    %c0_14 = arith.constant 0 : index
    %63 = vector.load %arg2[%c0_13, %c0_14] : memref<8x72xf32, #tpu.memory_space<vmem>>, vector<8x72xf32>
    %cst_15 = arith.constant dense<0.000000e+00> : vector<8x128xf32>
    %64 = tpu.matmul %63, %62, %cst_15 {dimension_numbers = #tpu.dot_dimension_numbers<[1], [0], [0], [1], [0, 0, 1, 1], [], []>} : vector<8x72xf32>, vector<72x128xf32>, vector<8x128xf32> -> vector<8x128xf32>
    %65 = vector.extract_strided_slice %1 {offsets = [0, 2], sizes = [8, 1], strides = [1, 1]} : vector<32x6xf32> to vector<8x1xf32>
    %66 = vector.extract_strided_slice %1 {offsets = [0, 3], sizes = [8, 1], strides = [1, 1]} : vector<32x6xf32> to vector<8x1xf32>
    %cst_16 = arith.constant dense<0.000000e+00> : vector<8xf32>
    %67 = vector.multi_reduction <add>, %64, %cst_16 [1] : vector<8x128xf32> to vector<8xf32>
    %68 = vector.shape_cast %67 : vector<8xf32> to vector<8x1xf32>
    %69 = arith.mulf %64, %64 : vector<8x128xf32>
    %cst_17 = arith.constant dense<0.000000e+00> : vector<8xf32>
    %70 = vector.multi_reduction <add>, %69, %cst_17 [1] : vector<8x128xf32> to vector<8xf32>
    %71 = vector.shape_cast %70 : vector<8xf32> to vector<8x1xf32>
    %cst_18 = arith.constant 7.812500e-03 : f32
    %72 = vector.broadcast %cst_18 : f32 to vector<8x1xf32>
    %73 = arith.mulf %68, %72 : vector<8x1xf32>
    %cst_19 = arith.constant 7.812500e-03 : f32
    %74 = vector.broadcast %cst_19 : f32 to vector<8x1xf32>
    %75 = arith.mulf %71, %74 : vector<8x1xf32>
    %76 = arith.mulf %73, %73 : vector<8x1xf32>
    %77 = arith.subf %75, %76 : vector<8x1xf32>
    %cst_20 = arith.constant 9.99999974E-6 : f32
    %78 = vector.broadcast %cst_20 : f32 to vector<8x1xf32>
    %79 = arith.addf %77, %78 : vector<8x1xf32>
    %80 = math.rsqrt %79 : vector<8x1xf32>
    %81 = arith.mulf %65, %80 : vector<8x1xf32>
    %82 = arith.mulf %73, %81 : vector<8x1xf32>
    %83 = arith.subf %66, %82 : vector<8x1xf32>
    %84 = vector.broadcast %81 : vector<8x1xf32> to vector<8x128xf32>
    %85 = arith.mulf %64, %84 : vector<8x128xf32>
    %86 = vector.broadcast %83 : vector<8x1xf32> to vector<8x128xf32>
    %87 = arith.addf %85, %86 : vector<8x128xf32>
    %cst_21 = arith.constant 0.000000e+00 : f32
    %88 = vector.broadcast %cst_21 : f32 to vector<8x128xf32>
    %89 = arith.maximumf %87, %88 : vector<8x128xf32>
    %c0_22 = arith.constant 0 : index
    %c0_23 = arith.constant 0 : index
    %90 = vector.load %arg3[%c0_22, %c0_23] : memref<32x8xf32, #tpu.memory_space<vmem>>, vector<32x8xf32>
    %cst_24 = arith.constant dense<0.000000e+00> : vector<32x128xf32>
    %91 = tpu.matmul %90, %89, %cst_24 {dimension_numbers = #tpu.dot_dimension_numbers<[1], [0], [0], [1], [0, 0, 1, 1], [], []>} : vector<32x8xf32>, vector<8x128xf32>, vector<32x128xf32> -> vector<32x128xf32>
    %92 = vector.extract_strided_slice %1 {offsets = [0, 4], sizes = [32, 1], strides = [1, 1]} : vector<32x6xf32> to vector<32x1xf32>
    %93 = vector.extract_strided_slice %1 {offsets = [0, 5], sizes = [32, 1], strides = [1, 1]} : vector<32x6xf32> to vector<32x1xf32>
    %cst_25 = arith.constant dense<0.000000e+00> : vector<32xf32>
    %94 = vector.multi_reduction <add>, %91, %cst_25 [1] : vector<32x128xf32> to vector<32xf32>
    %95 = vector.shape_cast %94 : vector<32xf32> to vector<32x1xf32>
    %96 = arith.mulf %91, %91 : vector<32x128xf32>
    %cst_26 = arith.constant dense<0.000000e+00> : vector<32xf32>
    %97 = vector.multi_reduction <add>, %96, %cst_26 [1] : vector<32x128xf32> to vector<32xf32>
    %98 = vector.shape_cast %97 : vector<32xf32> to vector<32x1xf32>
    %cst_27 = arith.constant 7.812500e-03 : f32
    %99 = vector.broadcast %cst_27 : f32 to vector<32x1xf32>
    %100 = arith.mulf %95, %99 : vector<32x1xf32>
    %cst_28 = arith.constant 7.812500e-03 : f32
    %101 = vector.broadcast %cst_28 : f32 to vector<32x1xf32>
    %102 = arith.mulf %98, %101 : vector<32x1xf32>
    %103 = arith.mulf %100, %100 : vector<32x1xf32>
    %104 = arith.subf %102, %103 : vector<32x1xf32>
    %cst_29 = arith.constant 9.99999974E-6 : f32
    %105 = vector.broadcast %cst_29 : f32 to vector<32x1xf32>
    %106 = arith.addf %104, %105 : vector<32x1xf32>
    %107 = math.rsqrt %106 : vector<32x1xf32>
    %108 = arith.mulf %92, %107 : vector<32x1xf32>
    %109 = arith.mulf %100, %108 : vector<32x1xf32>
    %110 = arith.subf %93, %109 : vector<32x1xf32>
    %111 = vector.broadcast %108 : vector<32x1xf32> to vector<32x128xf32>
    %112 = arith.mulf %91, %111 : vector<32x128xf32>
    %113 = vector.broadcast %110 : vector<32x1xf32> to vector<32x128xf32>
    %114 = arith.addf %112, %113 : vector<32x128xf32>
    %115 = arith.addf %114, %0 : vector<32x128xf32>
    %cst_30 = arith.constant 0.000000e+00 : f32
    %116 = vector.broadcast %cst_30 : f32 to vector<32x128xf32>
    %117 = arith.maximumf %115, %116 : vector<32x128xf32>
    %c0_31 = arith.constant 0 : index
    %c0_32 = arith.constant 0 : index
    %118 = vector.load %arg6[%c0_31, %c0_32] : memref<32x128xf32, #tpu.memory_space<vmem>>, vector<32x128xf32>
    tpu.vector_store %arg6[%c0_31, %c0_32], %117 {strides = array<i32>} : memref<32x128xf32, #tpu.memory_space<vmem>>, vector<32x128xf32>,
    return
  }
}

</mosaic_0001>

<bundles_post_ra>
// kernel: tpu_custom_call.1
= control target key start
LH: loop header
LB: loop body
LE: loop exit
PB: predicated region body
PF: predicated region fallthrough
CT: control target
= control target key end

     0   :  { %v700_v3 = vmov 0.0|0.0   ;;  %vm701_vm0 = vmmov 0   ;;  %v702_v6 = vmov 0.0   ;;  %s880_s0 = inlined_call_operand.vmem [shape: f32[32,128], index: 0, kind: input, shape index: {}]   ;;  %s881_s1 = inlined_call_operand.vmem [shape: f32[8,32], index: 1, kind: input, shape index: {}]   ;;  %s882_s2 = inlined_call_operand.vmem [shape: f32[8,72], index: 2, kind: input, shape index: {}]   ;;  %s883_s3 = inlined_call_operand.vmem [shape: f32[32,8], index: 3, kind: input, shape index: {}]   ;;  %s884_s4 = inlined_call_operand.vmem [shape: f32[32,6], index: 4, kind: input, shape index: {}]   ;;  %s885_s5 = inlined_call_operand.vmem [shape: f32[9,128], index: 5, kind: input, shape index: {}]   ;;  %s886_s6 = inlined_call_operand.hbm [shape: f32[32,128], index: 6, kind: output, shape index: {}]  }
   0x1   :  { %v757_v0 = vld [vmem:[%s880_s0] sm:$0xff]  ;;  %v762_v1 = vld [vmem:[%s880_s0 + $0x8] sm:$0xff]  ;;  %v767_v2 = vld [vmem:[%s880_s0 + $0x10] sm:$0xff]  ;;  %619 = vmatprep.subr.bf16.mxu0 %v700_v3  ;;  %587 = vmatprep.mubr.msk.f32.mxu0 %vm701_vm0, %v702_v6 }
   0x2   :  { %v620_v4 = vpack.c.bf16 %v762_v1, %v757_v0  ;;  %v775_v5 = vld [vmem:[%s880_s0 + $0x18] sm:$0xff] }
   0x3   :  { %11 = vsyncpa [#allocation3], 0  ;;  %625 = vmatprep.subr.bf16.mxu1 %v700_v3  ;;  %608 = vmatprep.mubr.msk.f32.mxu1 %vm701_vm0, %v702_v6  ;;  %v623_v7 = vpack.c.bf16 %v775_v5, %v767_v2  ;;  %v34_v8 = vld [vmem:[%s881_s1] sm:$0xff]  ;;  %vm35_vm1 = vcmask 261120   ;;  %v703_v12 = vmov 0   ;;  %v704_v20 = vmov 1  }
   0x4   :  { %621 = vmatpush3.bf16.msra.mxu0 %v620_v4  ;;  %656 = vset.pattern.permute.xlu1 %v703_v12  ;;  %v789_v21 = vld [vmem:[%s884_s4] sm:$0xff]  ;;  %s705_s7 = smov 1   ;;  %s706_s8 = smov 9   ;;  %v142_v32 = vlaneseq  ;;  %vm197_vm2 = vcmask 588800   ;;  %vm306_vm3 = vcmask 64512  }
   0x5   :  { %622 = vmatprep.subr.bf16.mxu0 %v700_v3  ;;  %657 = vset.pattern.permute.xlu0 %v704_v20  ;;  %s707_s9 = smov 8   ;;  %s708_s10 = smov 7   ;;  %v32_v36 = vld [vmem:[%s885_s5] sm:$0xff] }
   0x6   :  { %s709_s11 = smov 127   ;;  %s710_s12 = smov 121   ;;  %v143_v33 = vshrl.u32 %v142_v32, 7  ;;  %v196_v12 = vld [vmem:[%s882_s2] sm:$0xff] }
   0x7   :  { %s711_s13 = smov 120   ;;  %s712_s14 = smov 119  }
   0x8   :  { %624 = vmatpush3.bf16.msra.mxu0 %v623_v7  ;;  %v144_v34 = vsub.s32 0, %v143_v33  ;;  %v151_v35 = vsub.s32 1, %v143_v33  ;;  %v158_v43 = vsub.s32 2, %v143_v33  ;;  %v165_v44 = vsub.s32 3, %v143_v33 }
   0x9   :  { %v172_v49 = vsub.s32 5, %v143_v33  ;;  %v179_v57 = vsub.s32 6, %v143_v33  ;;  %v186_v58 = vsub.s32 7, %v143_v33 }
   0xa   :  { %v145_v38 = vrot.slane %v32_v36, %v144_v34  ;;  %v152_v39 = vrot.slane %v32_v36, %v151_v35  ;;  %v159_v47 = vrot.slane %v32_v36, %v158_v43  ;;  %v166_v48 = vrot.slane %v32_v36, %v165_v44  ;;  %v303_v35 = vld [vmem:[%s883_s3 + $0x8] sm:$0xff] }
   0xb   :  { %588 = vmatmul.mubr.msk.f32.vlgmr.msra.gmra.mrb[0].mxu0 %vm35_vm1, %v34_v8  ;;  %v173_v53 = vrot.slane %v32_v36, %v172_v49  ;;  %v180_v61 = vrot.slane %v32_v36, %v179_v57  ;;  %v187_v62 = vrot.slane %v32_v36, %v186_v58  ;;  %v304_v36 = vld [vmem:[%s883_s3 + $0x10] sm:$0xff] }
  0xde   :  { %v105_v9 = vpop.f32.mrb[0].mxu0 }
  0xdf   :  { %109 = vadd.xlane.f32.xlu0 %v105_v9  ;;  %v589_v10 = vpop.f32.mrb[1].mxu0  ;;  %v111_v11 = vmul.f32 %v105_v9, %v105_v9 }
  0xe3   :  { %112 = vadd.xlane.f32.xlu0 %v111_v11 }
 0x16c   :  { %v110_v13 = vpop.xlane.xlu0 %109 }
 0x16d   :  { %v114_v14 = vmul.f32 0.0078125, %v110_v13 }
 0x16f   :  { %v116_v16 = vmul.f32 %v114_v14, %v114_v14 }
 0x170   :  { %v113_v15 = vpop.xlane.xlu0 %112 }
 0x171   :  { %v115_v17 = vmul.f32 0.0078125, %v113_v15  ;;  %v713_v15 = vmov 2  }
 0x173   :  { %v117_v18 = vsub.f32 %v115_v17, %v116_v16 }
 0x175   :  { %v118_v19 = vadd.f32 1e-05, %v117_v18 }
 0x177   :  { %664 = vrsqrt.f32 %v118_v19 }
 0x181   :  { %v665_v22 = vpop.eup %664 }
 0x182   :  { %v120_v23 = vmul.f32 %v665_v22, %v789_v21 }
 0x184   :  { %v121_v24 = vmul.f32 %v120_v23, %v114_v14 }
 0x186   :  { %123 = vrot.lane.b32.xlu1 %v121_v24, %s705_s7 }
 0x18a   :  { %129 = vperm.xlu1 %656, %v120_v23   ;;  %v714_v23 = vmov 3  }
 0x18e   :  { %659 = vset.pattern.permute.xlu1 %v714_v23  ;;  %v30_v23 = vld [vmem:[%s884_s4 + $0x10] sm:$0xff] }
 0x1f8   :  { %v124_v25 = vpop.permute.xlu1 %123 }
 0x1f9   :  { %v126_v26 = vsub.f32 %v789_v21, %v124_v25 }
 0x1fb   :  { %135 = vperm.xlu0 %657, %v126_v26  }
 0x1ff   :  { %658 = vset.pattern.permute.xlu0 %v713_v15 }
 0x209   :  { %v130_v27 = vpop.permute.xlu1 %129 }
 0x20a   :  { %v132_v28 = vmul.f32 %v130_v27, %v105_v9  ;;  %v553_v9 = vld [vmem:[%s885_s5 + $0x8] ss:$0 sm:$0xff] }
 0x27a   :  { %v136_v29 = vpop.permute.xlu0 %135 }
 0x27b   :  { %v138_v30 = vadd.f32 %v136_v29, %v132_v28  ;;  %v302_v29 = vld [vmem:[%s883_s3] sm:$0xff] }
 0x27c   :  { %613 = vmatprep.mubr.msk.f32.mxu0 %vm306_vm3, %v302_v29 }
 0x27d   :  { %v139_v31 = vmax.f32 %v138_v30, 0.0 }
 0x27f   :  { %140 = vrot.lane.b32.xlu1 %v139_v31, %s706_s8 }
 0x283   :  { %147 = vrot.lane.b32.xlu1 %v139_v31, %s707_s9 }
 0x287   :  { %154 = vrot.lane.b32.xlu1 %v139_v31, %s708_s10 }
 0x28b   :  { %161 = vrot.lane.b32.xlu1 %v139_v31, %s705_s7 }
 0x28f   :  { %168 = vrot.lane.b32.xlu1 %v139_v31, %s709_s11 }
 0x293   :  { %175 = vrot.lane.b32.xlu1 %v139_v31, %s710_s12 }
 0x297   :  { %182 = vrot.lane.b32.xlu1 %v139_v31, %s711_s13 }
 0x29b   :  { %189 = vrot.lane.b32.xlu1 %v139_v31, %s712_s14 }
 0x2f1   :  { %v141_v37 = vpop.permute.xlu1 %140 }
 0x2f2   :  { %v146_v41 = vmul.f32 %v145_v38, %v141_v37  ;;  %v305_v37 = vld [vmem:[%s883_s3 + $0x18] sm:$0xff] }
 0x2f5   :  { %v148_v40 = vpop.permute.xlu1 %147 }
 0x2f6   :  { %v153_v42 = vmul.f32 %v152_v39, %v148_v40 }
 0x2f8   :  { %v626_v45 = vpack.c.bf16 %v153_v42, %v146_v41 }
 0x2f9   :  { %v155_v46 = vpop.permute.xlu1 %154 }
 0x2fa   :  { %627 = vmatpush3.bf16.msra.mxu1 %v626_v45  ;;  %v160_v51 = vmul.f32 %v159_v47, %v155_v46  ;;  %v715_v46 = vmov 4  }
 0x2fb   :  { %628 = vmatprep.subr.bf16.mxu1 %v700_v3 }
 0x2fd   :  { %v162_v50 = vpop.permute.xlu1 %161 }
 0x2fe   :  { %v167_v52 = vmul.f32 %v166_v48, %v162_v50 }
 0x300   :  { %v629_v54 = vpack.c.bf16 %v167_v52, %v160_v51 }
 0x301   :  { %v169_v55 = vpop.permute.xlu1 %168 }
 0x302   :  { %v174_v56 = vmul.f32 %v173_v53, %v169_v55  ;;  %630 = vmatpush3.bf16.msra.mxu1 %v629_v54 }
 0x303   :  { %631 = vmatprep.subr.bf16.mxu1 %v700_v3 }
 0x304   :  { %v632_v59 = vpack.c.bf16 %v174_v56, %v139_v31 }
 0x305   :  { %v176_v60 = vpop.permute.xlu1 %175 }
 0x306   :  { %633 = vmatpush3.bf16.msra.mxu1 %v632_v59  ;;  %v181_v4 = vmul.f32 %v180_v61, %v176_v60 }
 0x307   :  { %634 = vmatprep.subr.bf16.mxu1 %v700_v3 }
 0x309   :  { %v183_v63 = vpop.permute.xlu1 %182 }
 0x30a   :  { %v188_v7 = vmul.f32 %v187_v62, %v183_v63 }
 0x30c   :  { %v635_v8 = vpack.c.bf16 %v188_v7, %v181_v4  ;;  %v29_v4 = vld [vmem:[%s884_s4 + $0x8] sm:$0xff] }
 0x30d   :  { %v190_v10 = vpop.permute.xlu1 %189 }
 0x30e   :  { %636 = vmatpush3.bf16.msra.mxu1 %v635_v8  ;;  %v195_v11 = vmul.f32 %v553_v9, %v190_v10 }
 0x30f   :  { %606 = vmatprep.subr.mxu1 %v702_v6 }
 0x312   :  { %607 = vmatpush3.msra.mxu1 %v195_v11 }
 0x313   :  { %609 = vmatmul.mubr.msk.f32.vlgmr.msra.gmra.mrb[0].mxu1 %vm197_vm2, %v196_v12 }
 0x3e6   :  { %v267_v3 = vpop.f32.mrb[0].mxu1 }
 0x3e7   :  { %271 = vadd.xlane.f32.xlu1 %v267_v3  ;;  %v610_v13 = vpop.f32.mrb[1].mxu1  ;;  %v273_v14 = vmul.f32 %v267_v3, %v267_v3 }
 0x3e9   :  { %274 = vadd.xlane.f32.xlu0 %v273_v14 }
 0x474   :  { %v272_v16 = vpop.xlane.xlu1 %271 }
 0x475   :  { %v276_v17 = vmul.f32 0.0078125, %v272_v16 }
 0x476   :  { %v275_v18 = vpop.xlane.xlu0 %274 }
 0x477   :  { %v278_v19 = vmul.f32 %v276_v17, %v276_v17  ;;  %v277_v6 = vmul.f32 0.0078125, %v275_v18 }
 0x479   :  { %v279_v20 = vsub.f32 %v277_v6, %v278_v19 }
 0x47b   :  { %v280_v22 = vadd.f32 1e-05, %v279_v20 }
 0x47d   :  { %666 = vrsqrt.f32 %v280_v22 }
 0x487   :  { %v667_v24 = vpop.eup %666 }
 0x488   :  { %v282_v25 = vmul.f32 %v667_v24, %v789_v21 }
 0x48a   :  { %291 = vperm.xlu0 %658, %v282_v25   ;;  %v283_v26 = vmul.f32 %v282_v25, %v276_v17 }
 0x48c   :  { %285 = vrot.lane.b32.xlu1 %v283_v26, %s705_s7  ;;  %v31_v26 = vld [vmem:[%s884_s4 + $0x18] sm:$0xff]  ;;  %s717_s4 = smov [#allocation2]  }
 0x48d   :  { %s541_s1 = sshll.u32 %s717_s4, 4  ;;  %s542_s1 = int_to_ptr.vmem [resolvable:$true] %s541_s1 }
 0x48e   :  { %660 = vset.pattern.permute.xlu0 %v715_v46  ;;  %p681_p1 = scmp.lt.s32.totalorder %s542_s1, %s542_s1 }
 0x4fe   :  { %v286_v27 = vpop.permute.xlu1 %285 }
 0x4ff   :  { %v288_v28 = vsub.f32 %v789_v21, %v286_v27 }
 0x501   :  { %297 = vperm.xlu1 %659, %v288_v28  }
 0x505   :  { %661 = vset.pattern.permute.xlu1 %v715_v46 }
 0x509   :  { %v292_v30 = vpop.permute.xlu0 %291 }
 0x50a   :  { %v294_v31 = vmul.f32 %v292_v30, %v267_v3 }
 0x580   :  { %v298_v32 = vpop.permute.xlu1 %297 }
 0x581   :  { %v300_v33 = vadd.f32 %v298_v32, %v294_v31  ;;  %v716_v31 = vmov 5  }
 0x583   :  { %v301_v34 = vmax.f32 %v300_v33, 0.0 }
 0x585   :  { %611 = vmatprep.subr.mxu0 %v301_v34 }
 0x586   :  { %612 = vmatpush3.msra.mxu0 %v301_v34 }
 0x587   :  { %614 = vmatmul.mubr.msk.f32.vlgmr.msra.gmra.mrb[2].mxu0 %vm306_vm3, %v303_v35 }
 0x588   :  { %616 = vmatprep.mubr.msk.f32.mxu0 %vm306_vm3, %v304_v36 }
 0x58b   :  { %617 = vmatmul.mubr.msk.f32.gmra.mrb[4].mxu0 %vm306_vm3, %v305_v37 }
 0x65a   :  { %v824_v38 = vpop.f32.mrb[2].mxu0 }
 0x65b   :  { %v826_v39 = vpop.f32.mrb[3].mxu0  ;;  %406 = vadd.xlane.f32.xlu0 %v824_v38  ;;  %v413_v40 = vmul.f32 %v824_v38, %v824_v38 }
 0x65c   :  { %404 = vadd.xlane.f32.xlu1 %v826_v39  ;;  %v412_v43 = vmul.f32 %v826_v39, %v826_v39 }
 0x65e   :  { %v832_v41 = vpop.f32.mrb[4].mxu0 }
 0x65f   :  { %v834_v42 = vpop.f32.mrb[5].mxu0  ;;  %v415_v45 = vmul.f32 %v832_v41, %v832_v41 }
 0x660   :  { %418 = vadd.xlane.f32.xlu1 %v413_v40  ;;  %v414_v44 = vmul.f32 %v834_v42, %v834_v42 }
 0x664   :  { %416 = vadd.xlane.f32.xlu1 %v412_v43 }
 0x668   :  { %410 = vadd.xlane.f32.xlu1 %v832_v41 }
 0x66c   :  { %408 = vadd.xlane.f32.xlu1 %v834_v42 }
 0x670   :  { %420 = vadd.xlane.f32.xlu1 %v414_v44 }
 0x674   :  { %422 = vadd.xlane.f32.xlu1 %v415_v45 }
 0x6e8   :  { %v407_v47 = vpop.xlane.xlu0 %406 }
 0x6e9   :  { %v405_v48 = vpop.xlane.xlu1 %404  ;;  %v425_v49 = vmul.f32 0.0078125, %v407_v47 }
 0x6ea   :  { %v424_v51 = vmul.f32 0.0078125, %v405_v48 }
 0x6eb   :  { %v433_v52 = vmul.f32 %v425_v49, %v425_v49 }
 0x6ec   :  { %v432_v56 = vmul.f32 %v424_v51, %v424_v51 }
 0x6ed   :  { %v419_v50 = vpop.xlane.xlu1 %418 }
 0x6ee   :  { %v429_v53 = vmul.f32 0.0078125, %v419_v50 }
 0x6f0   :  { %v437_v54 = vsub.f32 %v429_v53, %v433_v52 }
 0x6f1   :  { %v417_v55 = vpop.xlane.xlu1 %416 }
 0x6f2   :  { %v441_v57 = vadd.f32 1e-05, %v437_v54  ;;  %v428_v58 = vmul.f32 0.0078125, %v417_v55 }
 0x6f4   :  { %668 = vrsqrt.f32 %v441_v57  ;;  %v436_v59 = vsub.f32 %v428_v58, %v432_v56 }
 0x6f5   :  { %v411_v60 = vpop.xlane.xlu1 %410 }
 0x6f6   :  { %v440_v61 = vadd.f32 1e-05, %v436_v59  ;;  %v427_v9 = vmul.f32 0.0078125, %v411_v60 }
 0x6f8   :  { %670 = vrsqrt.f32 %v440_v61  ;;  %v435_v16 = vmul.f32 %v427_v9, %v427_v9 }
 0x6f9   :  { %v409_v62 = vpop.xlane.xlu1 %408 }
 0x6fa   :  { %v426_v63 = vmul.f32 0.0078125, %v409_v62 }
 0x6fc   :  { %v434_v10 = vmul.f32 %v426_v63, %v426_v63 }
 0x6fd   :  { %v421_v7 = vpop.xlane.xlu1 %420 }
 0x6fe   :  { %v669_v8 = vpop.eup %668  ;;  %v430_v11 = vmul.f32 0.0078125, %v421_v7 }
 0x6ff   :  { %v449_v12 = vmul.f32 %v669_v8, %v29_v4 }
 0x700   :  { %v438_v3 = vsub.f32 %v430_v11, %v434_v10 }
 0x701   :  { %v423_v13 = vpop.xlane.xlu1 %422  ;;  %v453_v14 = vmul.f32 %v449_v12, %v425_v49 }
 0x702   :  { %v671_v15 = vpop.eup %670  ;;  %v442_v17 = vadd.f32 1e-05, %v438_v3  ;;  %v431_v18 = vmul.f32 0.0078125, %v423_v13 }
 0x703   :  { %462 = vrot.lane.b32.xlu0 %v453_v14, %s705_s7  ;;  %v448_v19 = vmul.f32 %v671_v15, %v789_v21 }
 0x704   :  { %672 = vrsqrt.f32 %v442_v17  ;;  %v439_v6 = vsub.f32 %v431_v18, %v435_v16 }
 0x705   :  { %v452_v20 = vmul.f32 %v448_v19, %v424_v51 }
 0x706   :  { %v443_v22 = vadd.f32 1e-05, %v439_v6 }
 0x707   :  { %478 = vperm.xlu0 %660, %v448_v19   ;;  %460 = vrot.lane.b32.xlu1 %v452_v20, %s705_s7 }
 0x708   :  { %674 = vrsqrt.f32 %v443_v22 }
 0x70e   :  { %v673_v24 = vpop.eup %672 }
 0x70f   :  { %v450_v25 = vmul.f32 %v673_v24, %v30_v23 }
 0x711   :  { %v454_v27 = vmul.f32 %v450_v25, %v426_v63 }
 0x712   :  { %v675_v28 = vpop.eup %674 }
 0x713   :  { %464 = vrot.lane.b32.xlu1 %v454_v27, %s705_s7  ;;  %v451_v29 = vmul.f32 %v675_v28, %v31_v26 }
 0x715   :  { %493 = vperm.xlu0 %660, %v451_v29   ;;  %v455_v30 = vmul.f32 %v451_v29, %v427_v9 }
 0x717   :  { %466 = vrot.lane.b32.xlu1 %v455_v30, %s705_s7  ;;  %s676_s7 = scalar_lea.vmem %s542_s1, 512 }
 0x718   :  { %p677_p0 = scmp.ne.s32.totalorder %s542_s1, %s676_s7  ;;  %p682_p2 = scmp.lt.s32.totalorder %s676_s7, %s676_s7 }
 0x719   :  { %663 = vset.pattern.permute.xlu0 %v716_v31 }
 0x71a   :  { %p683_p3 = por %p682_p2, %p681_p1 }
 0x71b   :  { %483 = vperm.xlu1 %661, %v449_v12  }
 0x71c   :  { %p684_p4 = pnand %p683_p3, %p677_p0 }
 0x71f   :  { %488 = vperm.xlu1 %661, %v450_v25  }
 0x723   :  { %662 = vset.pattern.permute.xlu1 %v716_v31 }
 0x775   :  { %v463_v32 = vpop.permute.xlu0 %462 }
 0x776   :  { %v473_v33 = vsub.f32 %v29_v4, %v463_v32 }
 0x778   :  { %507 = vperm.xlu0 %663, %v473_v33  }
 0x779   :  { %v461_v34 = vpop.permute.xlu1 %460 }
 0x77a   :  { %v472_v35 = vsub.f32 %v789_v21, %v461_v34 }
 0x77c   :  { %502 = vperm.xlu1 %662, %v472_v35  }
 0x785   :  { %v465_v36 = vpop.permute.xlu1 %464 }
 0x786   :  { %v474_v37 = vsub.f32 %v30_v23, %v465_v36  ;;  %v479_v44 = vpop.permute.xlu0 %478 }
 0x787   :  { %v496_v51 = vmul.f32 %v479_v44, %v826_v39 }
 0x788   :  { %512 = vperm.xlu1 %662, %v474_v37  }
 0x789   :  { %v467_v40 = vpop.permute.xlu1 %466 }
 0x78a   :  { %v475_v43 = vsub.f32 %v31_v26, %v467_v40 }
 0x78c   :  { %517 = vperm.xlu1 %662, %v475_v43  }
 0x794   :  { %v494_v46 = vpop.permute.xlu0 %493 }
 0x79a   :  { %v484_v45 = vpop.permute.xlu1 %483 }
 0x79b   :  { %v497_v47 = vmul.f32 %v824_v38, %v484_v45  ;;  %v499_v38 = vmul.f32 %v832_v41, %v494_v46 }
 0x79e   :  { %v489_v48 = vpop.permute.xlu1 %488 }
 0x79f   :  { %v498_v57 = vmul.f32 %v489_v48, %v834_v42 }
 0x7f7   :  { %v508_v49 = vpop.permute.xlu0 %507 }
 0x7f8   :  { %v521_v50 = vadd.f32 %v508_v49, %v497_v47 }
 0x7fa   :  { %v525_v52 = vadd.f32 %v521_v50, %v762_v1 }
 0x7fb   :  { %v503_v21 = vpop.permute.xlu1 %502 }
 0x7fc   :  { %v529_v53 = vmax.f32 %v525_v52, 0.0  ;;  %v520_v54 = vadd.f32 %v503_v21, %v496_v51 }
 0x7fe   :  { %533 = vst [vmem:[#allocation2 + $0x8] sm:$0xff] %v529_v53  ;;  %v524_v55 = vadd.f32 %v520_v54, %v757_v0 }
 0x800   :  { %v528_v56 = vmax.f32 %v524_v55, 0.0 }
 0x802   :  { %532 = vst [vmem:[#allocation2] sm:$0xff] %v528_v56 }
 0x807   :  { %v513_v58 = vpop.permute.xlu1 %512 }
 0x808   :  { %v522_v59 = vadd.f32 %v513_v58, %v498_v57 }
 0x80a   :  { %v526_v60 = vadd.f32 %v522_v59, %v767_v2 }
 0x80b   :  { %v518_v61 = vpop.permute.xlu1 %517 }
 0x80c   :  { %v530_v39 = vmax.f32 %v526_v60, 0.0  ;;  %v523_v62 = vadd.f32 %v518_v61, %v499_v38 }
 0x80e   :  { %534 = vst [vmem:[#allocation2 + $0x10] sm:$0xff] %v530_v39  ;;  %v527_v1 = vadd.f32 %v523_v62, %v775_v5 }
 0x810   :  { %v531_v63 = vmax.f32 %v527_v1, 0.0 }
 0x812   :  { %535 = vst [vmem:[#allocation2 + $0x18] sm:$0xff] %v531_v63 }
 0x813   :  { %687 = shalt.err (!%p684_p4)
}
 0x814   :  { %s688_s11 = scalar_lea.hbm %s886_s6, 512 }
 0x815   :  { %p689_p5 = scmp.ne.s32.totalorder %s886_s6, %s688_s11  ;;  %p692_p6 = scmp.lt.u32.totalorder %s688_s11, %s886_s6 }
 0x817   :  { %p694_p7 = pnand %p692_p6, %p689_p5 }
 0x819   :  { %697 = shalt.err (!%p694_p7)
}
 0x81a   :  { %s718_s16 = smov 128  }
 0x81b   :  { %547 = dma.vmem_to_hbm [thread:$0]  %s542_s1, 512, %s886_s6, [#allocation3], %s718_s16, %s718_s16, %s707_s9  }
 0x81c   :  { %698 = dma.done.wait [#allocation3], 512  }
 0x81d   :  { %699 = vsyncadd [#allocation3], 4294966784 }
 0x81e   :  { %551 = vsyncpa [#allocation3], 1 }

</bundles_post_ra>
